<compile_context>
chip_gen: v7x
topology: tpu7x:2x2x1
jax: 0.10.0
libtpu: 0.0.40
codegen_flags: <defaults>
</compile_context>

<pallas_src>
import functools

import jax
import jax.numpy as jnp
from jax import lax
from jax.experimental import pallas as pl
from jax.experimental.pallas import tpu as pltpu


def _lcblock_kernel(x_ref, w1_ref, b1_ref, mw_ref, bdw_ref, wfc1_ref, wfc2_ref,
                    pool_ref, sel_ref, o_ref, *, W):
    C, L = x_ref.shape
    x = x_ref[...]                                       # (C, L) lane-dense
    w1 = w1_ref[...]                                     # (C_out, C_in)
    b1 = b1_ref[...]                                     # (C, L) pre-broadcast

    # ---- conv1 (1x1): one channel matmul over all B*H*W pixels -------------
    y = jnp.dot(w1, x, preferred_element_type=jnp.float32) + b1          # (C, L)

    # ---- depthwise 3x3, stride 1, padding 1: 8 lane rolls + 9 FMAs ---------
    # mw_ref[k] already folds the per-channel tap weight and the
    # image/row/column border mask, so any tap that would read across an image
    # boundary (i.e. a zero-padding tap) contributes exactly zero.
    acc = y * mw_ref[4]                                  # center tap (dh=dw=0)
    for kh in range(3):
        for kw in range(3):
            if kh == 1 and kw == 1:
                continue
            off = (kh - 1) * W + (kw - 1)
            tap = pltpu.roll(y, shift=(-off) % L, axis=1)
            acc = acc + tap * mw_ref[kh * 3 + kw]
    y = acc + bdw_ref[...]                               # (C, L)

    # ---- SE block, batched over images --------------------------------------
    gap = jnp.dot(y, pool_ref[...], preferred_element_type=jnp.float32)      # (C, B)
    h1 = jnp.maximum(
        jnp.dot(wfc1_ref[...], gap, preferred_element_type=jnp.float32), 0.0)  # (hid, B)
    logits = jnp.dot(wfc2_ref[...], h1, preferred_element_type=jnp.float32)    # (C, B)
    s = 0.5 * (jnp.tanh(0.5 * logits) + 1.0)             # sigmoid, EUP-only
    gate = jnp.dot(s, sel_ref[...], preferred_element_type=jnp.float32)        # (C, L)
    y = y * gate

    # ---- conv1 again (shared weights, as in the PyTorch module) + residual --
    y = jnp.dot(w1, y, preferred_element_type=jnp.float32) + b1
    o_ref[...] = x + y                                   # single unmasked store


def lcblock_apply_packed(x_cl, packed_params, *, W):
    """Run the fused block on the packed lane-dense layout (C, B*H*W)."""
    w1, b1b, mw, bdwb, wfc1, wfc2, pool, sel = packed_params
    C, L = x_cl.shape
    kernel = functools.partial(_lcblock_kernel, W=W)
    return pl.pallas_call(
        kernel,
        out_shape=jax.ShapeDtypeStruct((C, L), jnp.float32),
        in_specs=[pl.BlockSpec(memory_space=pltpu.MemorySpace.VMEM)
                  for _ in range(9)],
        out_specs=pl.BlockSpec(memory_space=pltpu.MemorySpace.VMEM),
    )(x_cl, w1, b1b, mw, bdwb, wfc1, wfc2, pool, sel)


def lcblock_forward(x_nchw, packed_params):
    """NCHW wrapper: two tiny (32 KB) XLA transposes around the packed kernel."""
    B, C, H, W = x_nchw.shape
    x_cl = jnp.transpose(x_nchw, (1, 0, 2, 3)).reshape(C, B * H * W)
    out_cl = lcblock_apply_packed(x_cl, packed_params, W=W)
    return jnp.transpose(out_cl.reshape(C, B, H, W), (1, 0, 2, 3))


def init_params(key, C, ratio=16):
    """Deterministic synthetic parameters, PyTorch-native shapes."""
    hidden = C // ratio
    k1, k2, k3, k4, k5, k6 = jax.random.split(key, 6)
    w1 = 0.1 * jax.random.normal(k1, (C, C), jnp.float32)         # conv1 (out,in)
    b1 = 0.1 * jax.random.normal(k2, (C,), jnp.float32)           # conv1 bias
    wdw = 0.1 * jax.random.normal(k3, (C, 1, 3, 3), jnp.float32)  # depthwise OIHW
    bdw = 0.1 * jax.random.normal(k4, (C,), jnp.float32)          # depthwise bias
    wfc1 = 0.1 * jax.random.normal(k5, (hidden, C), jnp.float32)  # SE fc1 (out,in)
    wfc2 = 0.1 * jax.random.normal(k6, (C, hidden), jnp.float32)  # SE fc2 (out,in)
    return w1, b1, wdw, bdw, wfc1, wfc2


def pack_params(w1, b1, wdw, bdw, wfc1, wfc2, *, B, H, W):
    """PyTorch-native shapes -> kernel layouts (exact, precomputed masks)."""
    C = w1.shape[0]
    HW = H * W
    L = B * HW
    p = jnp.arange(L)
    hh = (p % HW) // W                      # row inside the image
    ww = p % W                              # column inside the image
    wdw9 = wdw.reshape(C, 9)                # (C,1,3,3) -> (C, kh*3+kw)

    # Per-tap weight plane folded with the zero-padding border mask.
    mws = []
    for kh in range(3):
        for kw in range(3):
            dh, dw = kh - 1, kw - 1
            valid = ((hh + dh >= 0) & (hh + dh < H) &
                     (ww + dw >= 0) & (ww + dw < W)).astype(jnp.float32)   # (L,)
            mws.append(wdw9[:, kh * 3 + kw][:, None] * valid[None, :])     # (C, L)
    mw = jnp.stack(mws, axis=0)                                            # (9, C, L)

    # Per-image pooling / selection matrices for the batched SE block.
    img = p // HW
    sel = (img[None, :] == jnp.arange(B)[:, None]).astype(jnp.float32)     # (B, L)
    pool = jnp.transpose(sel) / float(HW)                                  # (L, B)

    b1b = jnp.broadcast_to(b1[:, None], (C, L)).astype(jnp.float32)        # (C, L)
    bdwb = jnp.broadcast_to(bdw[:, None], (C, L)).astype(jnp.float32)      # (C, L)

    return (w1, b1b, mw, bdwb, wfc1, wfc2, pool, sel)


def lcblock_ref(x, w1, b1, wdw, bdw, wfc1, wfc2):
    """Pure-JAX reference matching the PyTorch forward (NCHW)."""
    C = w1.shape[0]

    def conv1(z):
        return jnp.einsum('bchw,oc->bohw', z, w1) + b1[None, :, None, None]

    y = conv1(x)
    y = lax.conv_general_dilated(y, wdw, (1, 1), ((1, 1), (1, 1)),
                                 feature_group_count=C,
                                 dimension_numbers=('NCHW', 'OIHW', 'NCHW'))
    y = y + bdw[None, :, None, None]
    gap = jnp.mean(y, axis=(2, 3))                        # (B, C)
    h = jnp.maximum(gap @ jnp.transpose(wfc1), 0.0)
    s = jax.nn.sigmoid(h @ jnp.transpose(wfc2))
    y = y * s[:, :, None, None]
    y = conv1(y)
    return x + y


if __name__ == "__main__":
    B, C, H, W = 2, 32, 8, 8     # in_chanel == out_chanel (required by the module)
    key = jax.random.PRNGKey(0)
    kx, kp = jax.random.split(key)
    x = jax.random.normal(kx, (B, C, H, W), jnp.float32)

    raw = init_params(kp, C)
    packed = pack_params(*raw, B=B, H=H, W=W)

    out = jax.block_until_ready(lcblock_forward(x, packed))

    ref = lcblock_ref(x, *raw)
    assert out.shape == ref.shape == (B, C, H, W)
    if not jnp.allclose(out, ref, atol=2e-4, rtol=2e-4):
        raise AssertionError(
            f"mismatch, max abs err = {float(jnp.max(jnp.abs(out - ref)))}")
    print("KERNEL_OK")
</pallas_src>

<mosaic_0001>
module attributes {stable_mosaic.version = 11 : i64} {
  func.func @_lcblock_kernel(%arg0: memref<32x128xf32, #tpu.memory_space<vmem>>, %arg1: memref<32x32xf32, #tpu.memory_space<vmem>>, %arg2: memref<32x128xf32, #tpu.memory_space<vmem>>, %arg3: memref<9x32x128xf32, #tpu.memory_space<vmem>>, %arg4: memref<32x128xf32, #tpu.memory_space<vmem>>, %arg5: memref<2x32xf32, #tpu.memory_space<vmem>>, %arg6: memref<32x2xf32, #tpu.memory_space<vmem>>, %arg7: memref<128x2xf32, #tpu.memory_space<vmem>>, %arg8: memref<2x128xf32, #tpu.memory_space<vmem>>, %arg9: memref<32x128xf32, #tpu.memory_space<vmem>>) attributes {dimension_semantics = [], scalar_prefetch = 0 : i64, scratch_operands = 0 : i64, tpu.core_type = #tpu.core_type<tc>} {
    %c0 = arith.constant 0 : index
    %c0_0 = arith.constant 0 : index
    %0 = vector.load %arg0[%c0, %c0_0] : memref<32x128xf32, #tpu.memory_space<vmem>>, vector<32x128xf32>
    %c0_1 = arith.constant 0 : index
    %c0_2 = arith.constant 0 : index
    %1 = vector.load %arg1[%c0_1, %c0_2] : memref<32x32xf32, #tpu.memory_space<vmem>>, vector<32x32xf32>
    %c0_3 = arith.constant 0 : index
    %c0_4 = arith.constant 0 : index
    %2 = vector.load %arg2[%c0_3, %c0_4] : memref<32x128xf32, #tpu.memory_space<vmem>>, vector<32x128xf32>
    %cst = arith.constant dense<0.000000e+00> : vector<32x128xf32>
    %3 = tpu.matmul %1, %0, %cst {dimension_numbers = #tpu.dot_dimension_numbers<[1], [0], [0], [1], [0, 0, 1, 1], [], []>} : vector<32x32xf32>, vector<32x128xf32>, vector<32x128xf32> -> vector<32x128xf32>
    %4 = arith.addf %3, %2 : vector<32x128xf32>
    %c4 = arith.constant 4 : index
    %c0_5 = arith.constant 0 : index
    %c0_6 = arith.constant 0 : index
    %5 = vector.load %arg3[%c4, %c0_5, %c0_6] : memref<9x32x128xf32, #tpu.memory_space<vmem>>, vector<1x32x128xf32>
    %6 = vector.shape_cast %5 : vector<1x32x128xf32> to vector<32x128xf32>
    %7 = arith.mulf %4, %6 : vector<32x128xf32>
    %c9_i32 = arith.constant 9 : i32
    %8 = tpu.dynamic_rotate %4 by %c9_i32 dim 1 : vector<32x128xf32>, i32 -> vector<32x128xf32>
    %c0_7 = arith.constant 0 : index
    %c0_8 = arith.constant 0 : index
    %c0_9 = arith.constant 0 : index
    %9 = vector.load %arg3[%c0_7, %c0_8, %c0_9] : memref<9x32x128xf32, #tpu.memory_space<vmem>>, vector<1x32x128xf32>
    %10 = vector.shape_cast %9 : vector<1x32x128xf32> to vector<32x128xf32>
    %11 = arith.mulf %8, %10 : vector<32x128xf32>
    %12 = arith.addf %7, %11 : vector<32x128xf32>
    %c8_i32 = arith.constant 8 : i32
    %13 = tpu.dynamic_rotate %4 by %c8_i32 dim 1 : vector<32x128xf32>, i32 -> vector<32x128xf32>
    %c1 = arith.constant 1 : index
    %c0_10 = arith.constant 0 : index
    %c0_11 = arith.constant 0 : index
    %14 = vector.load %arg3[%c1, %c0_10, %c0_11] : memref<9x32x128xf32, #tpu.memory_space<vmem>>, vector<1x32x128xf32>
    %15 = vector.shape_cast %14 : vector<1x32x128xf32> to vector<32x128xf32>
    %16 = arith.mulf %13, %15 : vector<32x128xf32>
    %17 = arith.addf %12, %16 : vector<32x128xf32>
    %c7_i32 = arith.constant 7 : i32
    %18 = tpu.dynamic_rotate %4 by %c7_i32 dim 1 : vector<32x128xf32>, i32 -> vector<32x128xf32>
    %c2 = arith.constant 2 : index
    %c0_12 = arith.constant 0 : index
    %c0_13 = arith.constant 0 : index
    %19 = vector.load %arg3[%c2, %c0_12, %c0_13] : memref<9x32x128xf32, #tpu.memory_space<vmem>>, vector<1x32x128xf32>
    %20 = vector.shape_cast %19 : vector<1x32x128xf32> to vector<32x128xf32>
    %21 = arith.mulf %18, %20 : vector<32x128xf32>
    %22 = arith.addf %17, %21 : vector<32x128xf32>
    %c1_i32 = arith.constant 1 : i32
    %23 = tpu.dynamic_rotate %4 by %c1_i32 dim 1 : vector<32x128xf32>, i32 -> vector<32x128xf32>
    %c3 = arith.constant 3 : index
    %c0_14 = arith.constant 0 : index
    %c0_15 = arith.constant 0 : index
    %24 = vector.load %arg3[%c3, %c0_14, %c0_15] : memref<9x32x128xf32, #tpu.memory_space<vmem>>, vector<1x32x128xf32>
    %25 = vector.shape_cast %24 : vector<1x32x128xf32> to vector<32x128xf32>
    %26 = arith.mulf %23, %25 : vector<32x128xf32>
    %27 = arith.addf %22, %26 : vector<32x128xf32>
    %c127_i32 = arith.constant 127 : i32
    %28 = tpu.dynamic_rotate %4 by %c127_i32 dim 1 : vector<32x128xf32>, i32 -> vector<32x128xf32>
    %c5 = arith.constant 5 : index
    %c0_16 = arith.constant 0 : index
    %c0_17 = arith.constant 0 : index
    %29 = vector.load %arg3[%c5, %c0_16, %c0_17] : memref<9x32x128xf32, #tpu.memory_space<vmem>>, vector<1x32x128xf32>
    %30 = vector.shape_cast %29 : vector<1x32x128xf32> to vector<32x128xf32>
    %31 = arith.mulf %28, %30 : vector<32x128xf32>
    %32 = arith.addf %27, %31 : vector<32x128xf32>
    %c121_i32 = arith.constant 121 : i32
    %33 = tpu.dynamic_rotate %4 by %c121_i32 dim 1 : vector<32x128xf32>, i32 -> vector<32x128xf32>
    %c6 = arith.constant 6 : index
    %c0_18 = arith.constant 0 : index
    %c0_19 = arith.constant 0 : index
    %34 = vector.load %arg3[%c6, %c0_18, %c0_19] : memref<9x32x128xf32, #tpu.memory_space<vmem>>, vector<1x32x128xf32>
    %35 = vector.shape_cast %34 : vector<1x32x128xf32> to vector<32x128xf32>
    %36 = arith.mulf %33, %35 : vector<32x128xf32>
    %37 = arith.addf %32, %36 : vector<32x128xf32>
    %c120_i32 = arith.constant 120 : i32
    %38 = tpu.dynamic_rotate %4 by %c120_i32 dim 1 : vector<32x128xf32>, i32 -> vector<32x128xf32>
    %c7 = arith.constant 7 : index
    %c0_20 = arith.constant 0 : index
    %c0_21 = arith.constant 0 : index
    %39 = vector.load %arg3[%c7, %c0_20, %c0_21] : memref<9x32x128xf32, #tpu.memory_space<vmem>>, vector<1x32x128xf32>
    %40 = vector.shape_cast %39 : vector<1x32x128xf32> to vector<32x128xf32>
    %41 = arith.mulf %38, %40 : vector<32x128xf32>
    %42 = arith.addf %37, %41 : vector<32x128xf32>
    %c119_i32 = arith.constant 119 : i32
    %43 = tpu.dynamic_rotate %4 by %c119_i32 dim 1 : vector<32x128xf32>, i32 -> vector<32x128xf32>
    %c8 = arith.constant 8 : index
    %c0_22 = arith.constant 0 : index
    %c0_23 = arith.constant 0 : index
    %44 = vector.load %arg3[%c8, %c0_22, %c0_23] : memref<9x32x128xf32, #tpu.memory_space<vmem>>, vector<1x32x128xf32>
    %45 = vector.shape_cast %44 : vector<1x32x128xf32> to vector<32x128xf32>
    %46 = arith.mulf %43, %45 : vector<32x128xf32>
    %47 = arith.addf %42, %46 : vector<32x128xf32>
    %c0_24 = arith.constant 0 : index
    %c0_25 = arith.constant 0 : index
    %48 = vector.load %arg4[%c0_24, %c0_25] : memref<32x128xf32, #tpu.memory_space<vmem>>, vector<32x128xf32>
    %49 = arith.addf %47, %48 : vector<32x128xf32>
    %c0_26 = arith.constant 0 : index
    %c0_27 = arith.constant 0 : index
    %50 = vector.load %arg7[%c0_26, %c0_27] : memref<128x2xf32, #tpu.memory_space<vmem>>, vector<128x2xf32>
    %cst_28 = arith.constant dense<0.000000e+00> : vector<32x2xf32>
    %51 = tpu.matmul %49, %50, %cst_28 {dimension_numbers = #tpu.dot_dimension_numbers<[1], [0], [0], [1], [0, 0, 1, 1], [], []>} : vector<32x128xf32>, vector<128x2xf32>, vector<32x2xf32> -> vector<32x2xf32>
    %c0_29 = arith.constant 0 : index
    %c0_30 = arith.constant 0 : index
    %52 = vector.load %arg5[%c0_29, %c0_30] : memref<2x32xf32, #tpu.memory_space<vmem>>, vector<2x32xf32>
    %cst_31 = arith.constant dense<0.000000e+00> : vector<2x2xf32>
    %53 = tpu.matmul %52, %51, %cst_31 {dimension_numbers = #tpu.dot_dimension_numbers<[1], [0], [0], [1], [0, 0, 1, 1], [], []>} : vector<2x32xf32>, vector<32x2xf32>, vector<2x2xf32> -> vector<2x2xf32>
    %cst_32 = arith.constant 0.000000e+00 : f32
    %54 = vector.broadcast %cst_32 : f32 to vector<2x2xf32>
    %55 = arith.maximumf %53, %54 : vector<2x2xf32>
    %c0_33 = arith.constant 0 : index
    %c0_34 = arith.constant 0 : index
    %56 = vector.load %arg6[%c0_33, %c0_34] : memref<32x2xf32, #tpu.memory_space<vmem>>, vector<32x2xf32>
    %cst_35 = arith.constant dense<0.000000e+00> : vector<32x2xf32>
    %57 = tpu.matmul %56, %55, %cst_35 {dimension_numbers = #tpu.dot_dimension_numbers<[1], [0], [0], [1], [0, 0, 1, 1], [], []>} : vector<32x2xf32>, vector<2x2xf32>, vector<32x2xf32> -> vector<32x2xf32>
    %cst_36 = arith.constant 5.000000e-01 : f32
    %58 = vector.broadcast %cst_36 : f32 to vector<32x2xf32>
    %59 = arith.mulf %58, %57 : vector<32x2xf32>
    %60 = math.tanh %59 : vector<32x2xf32>
    %cst_37 = arith.constant 1.000000e+00 : f32
    %61 = vector.broadcast %cst_37 : f32 to vector<32x2xf32>
    %62 = arith.addf %60, %61 : vector<32x2xf32>
    %cst_38 = arith.constant 5.000000e-01 : f32
    %63 = vector.broadcast %cst_38 : f32 to vector<32x2xf32>
    %64 = arith.mulf %63, %62 : vector<32x2xf32>
    %c0_39 = arith.constant 0 : index
    %c0_40 = arith.constant 0 : index
    %65 = vector.load %arg8[%c0_39, %c0_40] : memref<2x128xf32, #tpu.memory_space<vmem>>, vector<2x128xf32>
    %cst_41 = arith.constant dense<0.000000e+00> : vector<32x128xf32>
    %66 = tpu.matmul %64, %65, %cst_41 {dimension_numbers = #tpu.dot_dimension_numbers<[1], [0], [0], [1], [0, 0, 1, 1], [], []>} : vector<32x2xf32>, vector<2x128xf32>, vector<32x128xf32> -> vector<32x128xf32>
    %67 = arith.mulf %49, %66 : vector<32x128xf32>
    %cst_42 = arith.constant dense<0.000000e+00> : vector<32x128xf32>
    %68 = tpu.matmul %1, %67, %cst_42 {dimension_numbers = #tpu.dot_dimension_numbers<[1], [0], [0], [1], [0, 0, 1, 1], [], []>} : vector<32x32xf32>, vector<32x128xf32>, vector<32x128xf32> -> vector<32x128xf32>
    %69 = arith.addf %68, %2 : vector<32x128xf32>
    %70 = arith.addf %0, %69 : vector<32x128xf32>
    %c0_43 = arith.constant 0 : index
    %c0_44 = arith.constant 0 : index
    %71 = vector.load %arg9[%c0_43, %c0_44] : memref<32x128xf32, #tpu.memory_space<vmem>>, vector<32x128xf32>
    tpu.vector_store %arg9[%c0_43, %c0_44], %70 {strides = array<i32>} : memref<32x128xf32, #tpu.memory_space<vmem>>, vector<32x128xf32>,
    return
  }
}

</mosaic_0001>

<bundles_post_ra>
// kernel: tpu_custom_call.1
= control target key start
LH: loop header
LB: loop body
LE: loop exit
PB: predicated region body
PF: predicated region fallthrough
CT: control target
= control target key end

     0   :  { %14 = vsyncpa [#allocation3], 0  ;;  %s1524_s0 = inlined_call_operand.vmem [shape: f32[32,128], index: 0, kind: input, shape index: {}]   ;;  %s1525_s1 = inlined_call_operand.vmem [shape: f32[32,32], index: 1, kind: input, shape index: {}]   ;;  %s1526_s2 = inlined_call_operand.vmem [shape: f32[32,128], index: 2, kind: input, shape index: {}]   ;;  %s1527_s3 = inlined_call_operand.hbm [shape: f32[9,32,128], index: 3, kind: input, shape index: {}]   ;;  %s1528_s4 = inlined_call_operand.vmem [shape: f32[32,128], index: 4, kind: input, shape index: {}]   ;;  %s1529_s5 = inlined_call_operand.vmem [shape: f32[2,32], index: 5, kind: input, shape index: {}]   ;;  %s1530_s6 = inlined_call_operand.vmem [shape: f32[32,2], index: 6, kind: input, shape index: {}]   ;;  %s1531_s7 = inlined_call_operand.vmem [shape: f32[128,2], index: 7, kind: input, shape index: {}]   ;;  %s1532_s8 = inlined_call_operand.vmem [shape: f32[2,128], index: 8, kind: input, shape index: {}]   ;;  %s1533_s9 = inlined_call_operand.hbm [shape: f32[32,128], index: 9, kind: output, shape index: {}]  }
   0x1   :  { %15 = vsyncpa [#allocation4], 0  ;;  %s1141_s30 = smov [#allocation2]   ;;  %s1093_s13 = scalar_lea.hbm %s1527_s3, 4608 }
   0x2   :  { %s27_s10 = sshll.u32 %s1141_s30, 4  ;;  %p1094_p0 = scmp.ne.s32.totalorder %s1527_s3, %s1093_s13  ;;  %s28_s10 = int_to_ptr.vmem [resolvable:$true] %s27_s10 }
   0x3   :  { %p1097_p1 = scmp.lt.u32.totalorder %s1093_s13, %s1527_s3 }
   0x5   :  { %p1099_p2 = pnand %p1097_p1, %p1094_p0 }
   0x7   :  { %1102 = shalt.err (!%p1099_p2)
}
   0x8   :  { %s1103_s18 = scalar_lea.vmem %s28_s10, 4608  ;;  %p1108_p4 = scmp.lt.s32.totalorder %s28_s10, %s28_s10 }
   0x9   :  { %p1104_p3 = scmp.ne.s32.totalorder %s28_s10, %s1103_s18  ;;  %p1109_p5 = scmp.lt.s32.totalorder %s1103_s18, %s1103_s18 }
   0xb   :  { %p1110_p6 = por %p1109_p5, %p1108_p4 }
   0xd   :  { %p1111_p7 = pnand %p1110_p6, %p1104_p3 }
   0xf   :  { %1114 = shalt.err (!%p1111_p7)
}
  0x10   :  { %s1142_s19 = smov 128   ;;  %s1143_s20 = smov 8  }
  0x11   :  { %33 = dma.hbm_to_vmem [thread:$0]  %s1527_s3, 4608, %s28_s10, [#allocation3], %s1142_s19, %s1142_s19, %s1143_s20  }
  0x12   :  { %1137 = dma.done.wait [#allocation3], 4608  }
  0x13   :  { %1138 = vsyncadd [#allocation3], 4294962688  ;;  %vm59_vm0 = vcmask 261120   ;;  %v1223_v0 = vld [vmem:[%s1524_s0] sm:$0xff]  ;;  %v1228_v1 = vld [vmem:[%s1524_s0 + $0x8] sm:$0xff]  ;;  %s1145_s24 = smov 7  }
  0x14   :  { %v1233_v2 = vld [vmem:[%s1524_s0 + $0x10] sm:$0xff]  ;;  %v1017_v3 = vpack.c.bf16 %v1228_v1, %v1223_v0  ;;  %v1240_v4 = vld [vmem:[%s1524_s0 + $0x18] sm:$0xff]  ;;  %v1245_v5 = vld [vmem:[%s1525_s1] sm:$0xff]  ;;  %s1146_s25 = smov 1   ;;  %s1147_s29 = smov 127   ;;  %vm1152_vm1 = vmmov 0  }
  0x15   :  { %v1021_v6 = vpack.c.bf16 %v1240_v4, %v1233_v2  ;;  %932 = vmatprep.mubr.msk.f32.mxu0 %vm59_vm0, %v1245_v5  ;;  %v1254_v7 = vld [vmem:[%s1525_s1 + $0x8] sm:$0xff]  ;;  %v1259_v8 = vld [vmem:[%s1525_s1 + $0x10] sm:$0xff]  ;;  %v1268_v9 = vld [vmem:[%s1525_s1 + $0x18] sm:$0xff]  ;;  %s1144_s1 = smov 9   ;;  %s1148_s0 = smov 121   ;;  %vm521_vm2 = vcmask 15360  }
  0x16   :  { %1018 = vmatprep.subr.bf16.mxu0 %v1017_v3  ;;  %v1275_v10 = vld [vmem:[%s1526_s2 + $0x8] sm:$0xff]  ;;  %v1283_v14 = vld [vmem:[%s1526_s2] sm:$0xff]  ;;  %v1292_v15 = vld [vmem:[%s1526_s2 + $0x18] sm:$0xff]  ;;  %s1149_s17 = smov 120   ;;  %s1150_s26 = smov 119   ;;  %vm534_vm3 = vcmask 1041408  }
  0x17   :  { %1020 = vmatpush3.bf16.msra.mxu0 %v1017_v3  ;;  %v341_v20 = vld [vmem:[%s1531_s7] sm:$0xff]  ;;  %v342_v21 = vld [vmem:[%s1531_s7 + $0x8] sm:$0xff]  ;;  %v343_v23 = vld [vmem:[%s1531_s7 + $0x10] sm:$0xff] }
  0x18   :  { %1022 = vmatprep.subr.bf16.mxu0 %v1021_v6  ;;  %v1025_v22 = vpack.c.bf16 %v342_v21, %v341_v20  ;;  %v344_v24 = vld [vmem:[%s1531_s7 + $0x18] sm:$0xff]  ;;  %v345_v26 = vld [vmem:[%s1531_s7 + $0x20] sm:$0xff]  ;;  %v346_v27 = vld [vmem:[%s1531_s7 + $0x28] sm:$0xff] }
  0x19   :  { %v1029_v25 = vpack.c.bf16 %v344_v24, %v343_v23  ;;  %v1033_v28 = vpack.c.bf16 %v346_v27, %v345_v26  ;;  %v347_v29 = vld [vmem:[%s1531_s7 + $0x30] sm:$0xff]  ;;  %v348_v30 = vld [vmem:[%s1531_s7 + $0x38] sm:$0xff]  ;;  %v349_v33 = vld [vmem:[%s1531_s7 + $0x40] sm:$0xff] }
  0x1a   :  { %1026 = vmatprep.subr.bf16.mxu1 %v1025_v22  ;;  %v1037_v31 = vpack.c.bf16 %v348_v30, %v347_v29  ;;  %v1351_v32 = vld [vmem:[%s1526_s2 + $0x10] sm:$0xff]  ;;  %v350_v34 = vld [vmem:[%s1531_s7 + $0x48] sm:$0xff]  ;;  %v352_v38 = vld [vmem:[%s1531_s7 + $0x58] sm:$0xff] }
  0x1b   :  { %1024 = vmatpush3.bf16.msra.mxu0 %v1021_v6  ;;  %1028 = vmatpush3.bf16.msra.mxu1 %v1025_v22  ;;  %v1041_v35 = vpack.c.bf16 %v350_v34, %v349_v33  ;;  %v351_v37 = vld [vmem:[%s1531_s7 + $0x50] sm:$0xff]  ;;  %v353_v40 = vld [vmem:[%s1531_s7 + $0x60] sm:$0xff]  ;;  %v354_v41 = vld [vmem:[%s1531_s7 + $0x68] sm:$0xff] }
  0x1c   :  { %1030 = vmatprep.subr.bf16.mxu1 %v1029_v25  ;;  %v1045_v39 = vpack.c.bf16 %v352_v38, %v351_v37  ;;  %v1049_v42 = vpack.c.bf16 %v354_v41, %v353_v40  ;;  %v355_v43 = vld [vmem:[%s1531_s7 + $0x70] sm:$0xff]  ;;  %v356_v44 = vld [vmem:[%s1531_s7 + $0x78] sm:$0xff]  ;;  %v175_v62 = vld [vmem:[#allocation2 + $0x8] sm:$0xff] }
  0x1d   :  { %v1053_v45 = vpack.c.bf16 %v356_v44, %v355_v43  ;;  %v159_v63 = vld [vmem:[#allocation2 + $0x88] sm:$0xff]  ;;  %v158_v21 = vld [vmem:[#allocation2 + $0x80] sm:$0xff]  ;;  %v176_v43 = vld [vmem:[#allocation2 + $0x10] sm:$0xff] }
  0x1e   :  { %933 = vmatmul.mubr.msk.f32.vlgmr.msra.gmra.mrb[0].mxu0 %vm59_vm0, %v1254_v7  ;;  %v195_v22 = vld [vmem:[#allocation2 + $0x20] sm:$0xff]  ;;  %v238_v30 = vld [vmem:[#allocation2 + $0x68] sm:$0xff] }
  0x1f   :  { %935 = vmatprep.mubr.msk.f32.mxu0 %vm59_vm0, %v1259_v8  ;;  %1032 = vmatpush3.bf16.msra.mxu1 %v1029_v25  ;;  %v217_v25 = vld [vmem:[#allocation2 + $0x48] sm:$0xff]  ;;  %v258_v44 = vld [vmem:[#allocation2 + $0xa0] sm:$0xff] }
  0x20   :  { %1034 = vmatprep.subr.bf16.mxu1 %v1033_v28  ;;  %v259_v40 = vld [vmem:[#allocation2 + $0xa8] sm:$0xff] }
  0x22   :  { %936 = vmatmul.mubr.msk.f32.gmra.mrb[2].mxu0 %vm59_vm0, %v1268_v9 }
  0x23   :  { %1036 = vmatpush3.bf16.msra.mxu1 %v1033_v28  ;;  %v216_v28 = vld [vmem:[#allocation2 + $0x40] sm:$0xff] }
  0x24   :  { %1038 = vmatprep.subr.bf16.mxu1 %v1037_v31 }
  0x27   :  { %1040 = vmatpush3.bf16.msra.mxu1 %v1037_v31 }
  0x28   :  { %1042 = vmatprep.subr.bf16.mxu1 %v1041_v35 }
  0x2b   :  { %1044 = vmatpush3.bf16.msra.mxu1 %v1041_v35  ;;  %v237_v35 = vld [vmem:[#allocation2 + $0x60] sm:$0xff] }
  0x2c   :  { %1046 = vmatprep.subr.bf16.mxu1 %v1045_v39 }
  0x2f   :  { %1048 = vmatpush3.bf16.msra.mxu1 %v1045_v39  ;;  %v177_v39 = vld [vmem:[#allocation2 + $0x18] sm:$0xff] }
  0x30   :  { %1050 = vmatprep.subr.bf16.mxu1 %v1049_v42 }
  0x33   :  { %1052 = vmatpush3.bf16.msra.mxu1 %v1049_v42 }
  0x34   :  { %1054 = vmatprep.subr.bf16.mxu1 %v1053_v45 }
  0x37   :  { %1056 = vmatpush3.bf16.msra.mxu1 %v1053_v45  ;;  %v161_v45 = vld [vmem:[#allocation2 + $0x98] sm:$0xff] }
  0xf1   :  { %v934_v11 = vpop.f32.mrb[0].mxu0 }
  0xf2   :  { %v1278_v12 = vadd.f32 %v934_v11, %v1275_v10  ;;  %v138_v13 = vpop.f32.mrb[1].mxu0 }
  0xf3   :  { %v1295_v17 = vadd.f32 %v138_v13, %v1283_v14 }
  0xf4   :  { %188 = vrot.lane.b32.xlu1 %v1278_v12, %s1143_s20  ;;  %168 = vrot.lane.b32.xlu0 %v1278_v12, %s1144_s1  ;;  %v163_v13 = vmul.f32 %v159_v63, %v1278_v12 }
  0xf5   :  { %v937_v16 = vpop.f32.mrb[2].mxu0  ;;  %v162_v29 = vmul.f32 %v158_v21, %v1295_v17  ;;  %v301_v21 = vld [vmem:[#allocation2 + $0xe8] sm:$0xff] }
  0xf6   :  { %v148_v18 = vpop.f32.mrb[3].mxu0  ;;  %v1300_v19 = vadd.f32 %v937_v16, %v1292_v15  ;;  %v174_v16 = vld [vmem:[#allocation2] sm:$0xff] }
  0xf7   :  { %v1364_v36 = vadd.f32 %v148_v18, %v1351_v32  ;;  %v196_v18 = vld [vmem:[#allocation2 + $0x28] sm:$0xff] }
  0xf8   :  { %209 = vrot.lane.b32.xlu1 %v1278_v12, %s1145_s24  ;;  %166 = vrot.lane.b32.xlu0 %v1295_v17, %s1144_s1 }
  0xfc   :  { %230 = vrot.lane.b32.xlu1 %v1278_v12, %s1146_s25  ;;  %172 = vrot.lane.b32.xlu0 %v1300_v19, %s1144_s1 }
 0x100   :  { %251 = vrot.lane.b32.xlu1 %v1278_v12, %s1147_s29  ;;  %192 = vrot.lane.b32.xlu0 %v1300_v19, %s1143_s20 }
 0x104   :  { %272 = vrot.lane.b32.xlu1 %v1278_v12, %s1148_s0  ;;  %213 = vrot.lane.b32.xlu0 %v1300_v19, %s1145_s24 }
 0x108   :  { %293 = vrot.lane.b32.xlu1 %v1278_v12, %s1149_s17  ;;  %234 = vrot.lane.b32.xlu0 %v1300_v19, %s1146_s25 }
 0x10c   :  { %314 = vrot.lane.b32.xlu1 %v1278_v12, %s1150_s26  ;;  %255 = vrot.lane.b32.xlu0 %v1300_v19, %s1147_s29 }
 0x110   :  { %186 = vrot.lane.b32.xlu1 %v1295_v17, %s1143_s20  ;;  %276 = vrot.lane.b32.xlu0 %v1300_v19, %s1148_s0 }
 0x114   :  { %207 = vrot.lane.b32.xlu1 %v1295_v17, %s1145_s24  ;;  %170 = vrot.lane.b32.xlu0 %v1364_v36, %s1144_s1 }
 0x118   :  { %228 = vrot.lane.b32.xlu1 %v1295_v17, %s1146_s25  ;;  %190 = vrot.lane.b32.xlu0 %v1364_v36, %s1143_s20 }
 0x11c   :  { %249 = vrot.lane.b32.xlu1 %v1295_v17, %s1147_s29  ;;  %211 = vrot.lane.b32.xlu0 %v1364_v36, %s1145_s24 }
 0x120   :  { %270 = vrot.lane.b32.xlu1 %v1295_v17, %s1148_s0  ;;  %232 = vrot.lane.b32.xlu0 %v1364_v36, %s1146_s25 }
 0x124   :  { %291 = vrot.lane.b32.xlu1 %v1295_v17, %s1149_s17  ;;  %253 = vrot.lane.b32.xlu0 %v1364_v36, %s1147_s29 }
 0x128   :  { %312 = vrot.lane.b32.xlu1 %v1295_v17, %s1150_s26  ;;  %274 = vrot.lane.b32.xlu0 %v1364_v36, %s1148_s0 }
 0x12c   :  { %297 = vrot.lane.b32.xlu1 %v1300_v19, %s1149_s17  ;;  %295 = vrot.lane.b32.xlu0 %v1364_v36, %s1149_s17 }
 0x130   :  { %318 = vrot.lane.b32.xlu1 %v1300_v19, %s1150_s26  ;;  %316 = vrot.lane.b32.xlu0 %v1364_v36, %s1150_s26 }
 0x166   :  { %v189_v46 = vpop.permute.xlu1 %188  ;;  %v169_v47 = vpop.permute.xlu0 %168 }
 0x167   :  { %v179_v3 = vmul.f32 %v175_v62, %v169_v47  ;;  %v200_v27 = vmul.f32 %v196_v18, %v189_v46  ;;  %v198_v47 = vld [vmem:[#allocation2 + $0x38] sm:$0xff]  ;;  %v280_v46 = vld [vmem:[#allocation2 + $0xc8] sm:$0xff] }
 0x169   :  { %v183_v20 = vadd.f32 %v179_v3, %v163_v13  ;;  %v160_v3 = vld [vmem:[#allocation2 + $0x90] sm:$0xff]  ;;  %v279_v13 = vld [vmem:[#allocation2 + $0xc0] sm:$0xff] }
 0x16a   :  { %v210_v48 = vpop.permute.xlu1 %209  ;;  %v167_v49 = vpop.permute.xlu0 %166 }
 0x16b   :  { %v178_v26 = vmul.f32 %v174_v16, %v167_v49  ;;  %v204_v33 = vadd.f32 %v200_v27, %v183_v20  ;;  %v221_v34 = vmul.f32 %v217_v25, %v210_v48  ;;  %v197_v48 = vld [vmem:[#allocation2 + $0x30] sm:$0xff]  ;;  %v219_v20 = vld [vmem:[#allocation2 + $0x58] sm:$0xff] }
 0x16d   :  { %v182_v38 = vadd.f32 %v178_v26, %v162_v29  ;;  %v225_v17 = vadd.f32 %v221_v34, %v204_v33  ;;  %v165_v26 = vmul.f32 %v161_v45, %v1300_v19  ;;  %v218_v29 = vld [vmem:[#allocation2 + $0x50] sm:$0xff] }
 0x16e   :  { %v231_v50 = vpop.permute.xlu1 %230  ;;  %v173_v51 = vpop.permute.xlu0 %172 }
 0x16f   :  { %v242_v42 = vmul.f32 %v238_v30, %v231_v50  ;;  %v181_v63 = vmul.f32 %v177_v39, %v173_v51  ;;  %v240_v30 = vld [vmem:[#allocation2 + $0x78] sm:$0xff]  ;;  %v322_v51 = vld [vmem:[#allocation2 + $0x108] sm:$0xff] }
 0x171   :  { %v246_v25 = vadd.f32 %v242_v42, %v225_v17 }
 0x172   :  { %v252_v52 = vpop.permute.xlu1 %251  ;;  %v193_v53 = vpop.permute.xlu0 %192 }
 0x173   :  { %v202_v27 = vmul.f32 %v198_v47, %v193_v53  ;;  %v261_v53 = vld [vmem:[#allocation2 + $0xb8] sm:$0xff]  ;;  %v260_v47 = vld [vmem:[#allocation2 + $0xb0] sm:$0xff] }
 0x176   :  { %v273_v54 = vpop.permute.xlu1 %272  ;;  %v1416_v55 = vpop.permute.xlu0 %213 }
 0x177   :  { %v223_v39 = vmul.f32 %v219_v20, %v1416_v55 }
 0x17a   :  { %v1418_v56 = vpop.permute.xlu1 %293  ;;  %v1420_v57 = vpop.permute.xlu0 %234 }
 0x17e   :  { %v1422_v58 = vpop.permute.xlu1 %314  ;;  %v1424_v59 = vpop.permute.xlu0 %255 }
 0x182   :  { %v187_v60 = vpop.permute.xlu1 %186  ;;  %v1426_v61 = vpop.permute.xlu0 %276 }
 0x183   :  { %v199_v31 = vmul.f32 %v195_v22, %v187_v60  ;;  %v263_v60 = vmul.f32 %v259_v40, %v252_v52  ;;  %v164_v52 = vmul.f32 %v160_v3, %v1364_v36  ;;  %v244_v36 = vmul.f32 %v240_v30, %v1420_v57 }
 0x185   :  { %v203_v49 = vadd.f32 %v199_v31, %v182_v38  ;;  %v267_v38 = vadd.f32 %v263_v60, %v246_v25  ;;  %v282_v60 = vld [vmem:[#allocation2 + $0xd8] sm:$0xff] }
 0x186   :  { %v208_v6 = vpop.permute.xlu1 %207  ;;  %v171_v11 = vpop.permute.xlu0 %170 }
 0x187   :  { %v220_v41 = vmul.f32 %v216_v28, %v208_v6  ;;  %v180_v6 = vmul.f32 %v176_v43, %v171_v11  ;;  %v284_v28 = vmul.f32 %v280_v46, %v273_v54  ;;  %v305_v11 = vmul.f32 %v301_v21, %v1418_v56  ;;  %v321_v46 = vld [vmem:[#allocation2 + $0x100] sm:$0xff] }
 0x189   :  { %v224_v22 = vadd.f32 %v220_v41, %v203_v49  ;;  %v184_v54 = vadd.f32 %v180_v6, %v164_v52  ;;  %v288_v45 = vadd.f32 %v284_v28, %v267_v38  ;;  %v302_v6 = vld [vmem:[#allocation2 + $0xf0] sm:$0xff] }
 0x18a   :  { %v229_v23 = vpop.permute.xlu1 %228  ;;  %v191_v24 = vpop.permute.xlu0 %190 }
 0x18b   :  { %v241_v62 = vmul.f32 %v237_v35, %v229_v23  ;;  %v300_v23 = vld [vmem:[#allocation2 + $0xe0] sm:$0xff]  ;;  %v201_v33 = vmul.f32 %v197_v48, %v191_v24  ;;  %v185_v35 = vadd.f32 %v181_v63, %v165_v26  ;;  %v326_v24 = vmul.f32 %v322_v51, %v1422_v58  ;;  %v281_v48 = vld [vmem:[#allocation2 + $0xd0] sm:$0xff]  ;;  %v303_v58 = vld [vmem:[#allocation2 + $0xf8] sm:$0xff] }
 0x18c   :  { %v309_v17 = vadd.f32 %v305_v11, %v288_v45  ;;  %v265_v63 = vmul.f32 %v261_v53, %v1424_v59 }
 0x18d   :  { %v245_v31 = vadd.f32 %v241_v62, %v224_v22  ;;  %v205_v49 = vadd.f32 %v201_v33, %v184_v54  ;;  %v324_v33 = vld [vmem:[#allocation2 + $0x118] sm:$0xff]  ;;  %v335_v54 = vld [vmem:[%s1528_s4 + $0x10] sm:$0xff] }
 0x18e   :  { %v250_v37 = vpop.permute.xlu1 %249  ;;  %v212_v12 = vpop.permute.xlu0 %211  ;;  %v330_v22 = vadd.f32 %v326_v24, %v309_v17  ;;  %v1153_v24 = vmov 0.0   ;;  %v442_v17 = vld [vmem:[%s1529_s5] sm:$0x3] }
 0x18f   :  { %v262_v50 = vmul.f32 %v258_v44, %v250_v37  ;;  %v239_v37 = vld [vmem:[#allocation2 + $0x70] sm:$0xff]  ;;  %v222_v42 = vmul.f32 %v218_v29, %v212_v12  ;;  %v206_v44 = vadd.f32 %v202_v27, %v185_v35  ;;  %v334_v27 = vld [vmem:[%s1528_s4 + $0x8] sm:$0xff]  ;;  %984 = vmatprep.mubr.msk.f32.mxu0 %vm1152_vm1, %v1153_v24 }
 0x190   :  { %v1446_v35 = vadd.f32 %v334_v27, %v330_v22 }
 0x191   :  { %v266_v41 = vadd.f32 %v262_v50, %v245_v31  ;;  %v227_v56 = vadd.f32 %v223_v39, %v206_v44  ;;  %v286_v50 = vmul.f32 %v282_v60, %v1426_v61 }
 0x192   :  { %v271_v16 = vpop.permute.xlu1 %270  ;;  %v233_v18 = vpop.permute.xlu0 %232 }
 0x193   :  { %v283_v34 = vmul.f32 %v279_v13, %v271_v16  ;;  %v243_v62 = vmul.f32 %v239_v37, %v233_v18  ;;  %v226_v13 = vadd.f32 %v222_v42, %v205_v49  ;;  %v248_v57 = vadd.f32 %v244_v36, %v227_v56  ;;  %v333_v18 = vld [vmem:[%s1528_s4] sm:$0xff] }
 0x194   :  { %v1151_v36 = vmov 0.0|0.0  }
 0x195   :  { %v287_v55 = vadd.f32 %v283_v34, %v266_v41  ;;  %v247_v25 = vadd.f32 %v243_v62, %v226_v13  ;;  %v269_v28 = vadd.f32 %v265_v63, %v248_v57  ;;  %v323_v34 = vld [vmem:[#allocation2 + $0x110] sm:$0xff]  ;;  %v336_v41 = vld [vmem:[%s1528_s4 + $0x18] sm:$0xff]  ;;  %1057 = vmatprep.subr.bf16.mxu0 %v1151_v36  ;;  %v517_v63 = vld [vmem:[%s1530_s6] sm:$0xff] }
 0x196   :  { %v292_v40 = vpop.permute.xlu1 %291  ;;  %v254_v19 = vpop.permute.xlu0 %253  ;;  %v519_v13 = vld [vmem:[%s1530_s6 + $0x10] sm:$0xff] }
 0x197   :  { %v304_v43 = vmul.f32 %v300_v23, %v292_v40  ;;  %v264_v20 = vmul.f32 %v260_v47, %v254_v19  ;;  %v290_v61 = vadd.f32 %v286_v50, %v269_v28 }
 0x199   :  { %v308_v16 = vadd.f32 %v304_v43, %v287_v55  ;;  %v268_v30 = vadd.f32 %v264_v20, %v247_v25  ;;  %v639_v20 = vld [vmem:[%s1532_s8] sm:$0x3] }
 0x19a   :  { %v313_v3 = vpop.permute.xlu1 %312  ;;  %v275_v12 = vpop.permute.xlu0 %274 }
 0x19b   :  { %v325_v21 = vmul.f32 %v321_v46, %v313_v3  ;;  %v285_v26 = vmul.f32 %v281_v48, %v275_v12  ;;  %v518_v12 = vld [vmem:[%s1530_s6 + $0x8] sm:$0xff] }
 0x19d   :  { %v329_v59 = vadd.f32 %v325_v21, %v308_v16  ;;  %v289_v38 = vadd.f32 %v285_v26, %v268_v30  ;;  %v520_v16 = vld [vmem:[%s1530_s6 + $0x18] sm:$0xff]  ;;  %s1154_s6 = smov [#allocation5]  }
 0x19e   :  { %v298_v29 = vpop.permute.xlu1 %297  ;;  %v296_v23 = vpop.permute.xlu0 %295  ;;  %s842_s8 = sshll.u32 %s1154_s6, 4  ;;  %s843_s8 = int_to_ptr.vmem [resolvable:$true] %s842_s8 }
 0x19f   :  { %v307_v51 = vmul.f32 %v303_v58, %v298_v29  ;;  %v306_v52 = vmul.f32 %v302_v6, %v296_v23  ;;  %v1444_v31 = vadd.f32 %v333_v18, %v329_v59  ;;  %s1115_s18 = scalar_lea.vmem %s843_s8, 512  ;;  %p1120_p9 = scmp.lt.s32.totalorder %s843_s8, %s843_s8 }
 0x1a0   :  { %p1116_p8 = scmp.ne.s32.totalorder %s843_s8, %s1115_s18  ;;  %p1121_p10 = scmp.lt.s32.totalorder %s1115_s18, %s1115_s18 }
 0x1a1   :  { %970 = vmatprep.mubr.f32.mxu1 %v1444_v31  ;;  %v311_v37 = vadd.f32 %v307_v51, %v290_v61  ;;  %v310_v40 = vadd.f32 %v306_v52, %v289_v38 }
 0x1a2   :  { %v319_v39 = vpop.permute.xlu1 %318  ;;  %v317_v11 = vpop.permute.xlu0 %316  ;;  %971 = vmatmul.mubr.f32.vlgmr.msra.gmra.mrb[0].mxu1 %v1446_v35  ;;  %p1122_p11 = por %p1121_p10, %p1120_p9 }
 0x1a3   :  { %v328_v19 = vmul.f32 %v324_v33, %v319_v39  ;;  %v327_v53 = vmul.f32 %v323_v34, %v317_v11 }
 0x1a4   :  { %p1123_p12 = pnand %p1122_p11, %p1116_p8 }
 0x1a5   :  { %v332_v42 = vadd.f32 %v328_v19, %v311_v37  ;;  %v331_v43 = vadd.f32 %v327_v53, %v310_v40 }
 0x1a7   :  { %v1456_v44 = vadd.f32 %v335_v54, %v331_v43  ;;  %v1458_v45 = vadd.f32 %v336_v41, %v332_v42 }
 0x1a9   :  { %973 = vmatprep.mubr.f32.mxu1 %v1456_v44 }
 0x1aa   :  { %974 = vmatmul.mubr.f32.gmra.mrb[2].mxu1 %v1458_v45 }
 0x275   :  { %v972_v47 = vpop.f32.mrb[0].mxu1 }
 0x276   :  { %v423_v46 = vpop.f32.mrb[1].mxu1 }
 0x277   :  { %v1058_v49 = vpack.c.bf16 %v972_v47, %v423_v46 }
 0x279   :  { %1059 = vmatpush3.bf16.msra.mxu0 %v1058_v49 }
 0x27a   :  { %1060 = vmatprep.subr.bf16.mxu0 %v1151_v36 }
 0x27d   :  { %v975_v55 = vpop.f32.mrb[2].mxu1 }
 0x27e   :  { %v433_v62 = vpop.f32.mrb[3].mxu1 }
 0x27f   :  { %v1061_v56 = vpack.c.bf16 %v975_v55, %v433_v62 }
 0x281   :  { %1062 = vmatpush3.bf16.msra.mxu0 %v1061_v56 }
 0x284   :  { %985 = vmatmul.mubr.msk.f32.vlgmr.msra.gmra.mrb[4].mxu0 %vm59_vm0, %v442_v17 }
 0x285   :  { %989 = vmatprep.mubr.msk.f32.mxu0 %vm521_vm2, %v517_v63 }
 0x357   :  { %v512_v60 = vpop.f32.mrb[4].mxu0 }
 0x358   :  { %v516_v3 = vmax.f32 %v512_v60, 0.0  ;;  %v986_v48 = vpop.f32.mrb[5].mxu0 }
 0x35a   :  { %987 = vmatprep.subr.msk.mxu0 %vm534_vm3, %v516_v3 }
 0x35b   :  { %988 = vmatpush3.msk.msra.mxu0 %vm534_vm3, %v516_v3 }
 0x35c   :  { %990 = vmatmul.mubr.msk.f32.vlgmr.msra.gmra.mrb[6].mxu0 %vm521_vm2, %v518_v12  ;;  %995 = vmatprep.subr.msk.mxu0 %vm534_vm3, %v639_v20 }
 0x35d   :  { %992 = vmatprep.mubr.msk.f32.mxu0 %vm521_vm2, %v519_v13  ;;  %996 = vmatpush3.msk.msra.mxu0 %vm534_vm3, %v639_v20 }
 0x360   :  { %993 = vmatmul.mubr.msk.f32.gmra.mrb[8].mxu0 %vm521_vm2, %v520_v16 }
 0x42f   :  { %v991_v21 = vpop.f32.mrb[6].mxu0 }
 0x430   :  { %v624_v57 = vmul.f32 0.5, %v991_v21  ;;  %v604_v22 = vpop.f32.mrb[7].mxu0 }
 0x431   :  { %v623_v58 = vmul.f32 0.5, %v604_v22 }
 0x432   :  { %1085 = vtanh.f32 %v624_v57 }
 0x433   :  { %1087 = vtanh.f32 %v623_v58  ;;  %v994_v6 = vpop.f32.mrb[8].mxu0 }
 0x434   :  { %v626_v18 = vmul.f32 0.5, %v994_v6  ;;  %v614_v50 = vpop.f32.mrb[9].mxu0 }
 0x435   :  { %v625_v25 = vmul.f32 0.5, %v614_v50 }
 0x436   :  { %1089 = vtanh.f32 %v626_v18 }
 0x437   :  { %1091 = vtanh.f32 %v625_v25 }
 0x43c   :  { %v1086_v59 = vpop.eup %1085 }
 0x43d   :  { %v1088_v26 = vpop.eup %1087  ;;  %v632_v27 = vadd.f32 1.0, %v1086_v59 }
 0x43e   :  { %v631_v28 = vadd.f32 1.0, %v1088_v26 }
 0x43f   :  { %v636_v51 = vmul.f32 0.5, %v632_v27 }
 0x440   :  { %v1090_v29 = vpop.eup %1089  ;;  %v635_v23 = vmul.f32 0.5, %v631_v28 }
 0x441   :  { %v1092_v30 = vpop.eup %1091  ;;  %v634_v52 = vadd.f32 1.0, %v1090_v29 }
 0x442   :  { %v633_v33 = vadd.f32 1.0, %v1092_v30  ;;  %997 = vmatprep.mubr.msk.f32.mxu0 %vm521_vm2, %v635_v23 }
 0x443   :  { %998 = vmatmul.mubr.msk.f32.vlgmr.msra.gmra.mrb[10].mxu0 %vm521_vm2, %v636_v51  ;;  %v638_v61 = vmul.f32 0.5, %v634_v52 }
 0x444   :  { %v637_v34 = vmul.f32 0.5, %v633_v33 }
 0x446   :  { %1000 = vmatprep.mubr.msk.f32.mxu0 %vm521_vm2, %v637_v34 }
 0x447   :  { %1001 = vmatmul.mubr.msk.f32.gmra.mrb[12].mxu0 %vm521_vm2, %v638_v61 }
 0x448   :  { %1011 = vmatprep.mubr.msk.f32.mxu0 %vm59_vm0, %v1245_v5 }
 0x516   :  { %v999_v38 = vpop.f32.mrb[10].mxu0 }
 0x517   :  { %v741_v39 = vmul.f32 %v999_v38, %v1446_v35  ;;  %v721_v11 = vpop.f32.mrb[11].mxu0 }
 0x518   :  { %v740_v37 = vmul.f32 %v721_v11, %v1444_v31 }
 0x51a   :  { %v1063_v40 = vpack.c.bf16 %v741_v39, %v740_v37  ;;  %v1002_v19 = vpop.f32.mrb[12].mxu0 }
 0x51b   :  { %v743_v53 = vmul.f32 %v1002_v19, %v1458_v45  ;;  %v731_v54 = vpop.f32.mrb[13].mxu0 }
 0x51c   :  { %v742_v41 = vmul.f32 %v731_v54, %v1456_v44  ;;  %1064 = vmatprep.subr.bf16.mxu0 %v1063_v40 }
 0x51d   :  { %1066 = vmatpush3.bf16.msra.mxu0 %v1063_v40 }
 0x51e   :  { %v1067_v42 = vpack.c.bf16 %v743_v53, %v742_v41 }
 0x520   :  { %1068 = vmatprep.subr.bf16.mxu0 %v1067_v42 }
 0x521   :  { %1070 = vmatpush3.bf16.msra.mxu0 %v1067_v42 }
 0x524   :  { %1012 = vmatmul.mubr.msk.f32.vlgmr.msra.gmra.mrb[14].mxu0 %vm59_vm0, %v1254_v7 }
 0x525   :  { %1014 = vmatprep.mubr.msk.f32.mxu0 %vm59_vm0, %v1259_v8 }
 0x528   :  { %1015 = vmatmul.mubr.msk.f32.gmra.mrb[16].mxu0 %vm59_vm0, %v1268_v9 }
 0x5f7   :  { %v1013_v5 = vpop.f32.mrb[14].mxu0 }
 0x5f8   :  { %v816_v31 = vadd.f32 %v1013_v5, %v1275_v10  ;;  %v810_v35 = vpop.f32.mrb[15].mxu0 }
 0x5f9   :  { %v811_v43 = vadd.f32 %v810_v35, %v1283_v14 }
 0x5fa   :  { %v830_v44 = vadd.f32 %v816_v31, %v1228_v1 }
 0x5fb   :  { %v829_v45 = vadd.f32 %v811_v43, %v1223_v0  ;;  %v1016_v36 = vpop.f32.mrb[16].mxu0 }
 0x5fc   :  { %834 = vst [vmem:[#allocation5 + $0x8] sm:$0xff] %v830_v44  ;;  %v826_v7 = vadd.f32 %v1016_v36, %v1292_v15  ;;  %v820_v24 = vpop.f32.mrb[17].mxu0 }
 0x5fd   :  { %833 = vst [vmem:[#allocation5] sm:$0xff] %v829_v45  ;;  %v821_v8 = vadd.f32 %v820_v24, %v1351_v32 }
 0x5fe   :  { %v832_v9 = vadd.f32 %v826_v7, %v1240_v4 }
 0x5ff   :  { %v831_v10 = vadd.f32 %v821_v8, %v1233_v2 }
 0x600   :  { %836 = vst [vmem:[#allocation5 + $0x18] sm:$0xff] %v832_v9 }
 0x601   :  { %835 = vst [vmem:[#allocation5 + $0x10] sm:$0xff] %v831_v10 }
 0x602   :  { %1126 = shalt.err (!%p1123_p12)
}
 0x603   :  { %s1127_s22 = scalar_lea.hbm %s1533_s9, 512 }
 0x604   :  { %p1128_p13 = scmp.ne.s32.totalorder %s1533_s9, %s1127_s22  ;;  %p1131_p0 = scmp.lt.u32.totalorder %s1127_s22, %s1533_s9 }
 0x606   :  { %p1133_p1 = pnand %p1131_p0, %p1128_p13 }
 0x608   :  { %1136 = shalt.err (!%p1133_p1)
}
 0x609   :  { %848 = dma.vmem_to_hbm [thread:$0]  %s843_s8, 512, %s1533_s9, [#allocation4], %s1142_s19, %s1142_s19, %s1143_s20  }
 0x60a   :  { %1139 = dma.done.wait [#allocation4], 512  }
 0x60b   :  { %1140 = vsyncadd [#allocation4], 4294966784 }
 0x60c   :  { %852 = vsyncpa [#allocation3], 1 }
 0x60d   :  { %853 = vsyncpa [#allocation4], 1 }

</bundles_post_ra>
